<compile_context>
chip_gen: v6e
topology: v6e:2x2x1
jax: 0.10.0
libtpu: 0.0.40
codegen_flags: <defaults>
</compile_context>

<pallas_src>
import jax
import jax.numpy as jnp
from jax.experimental import pallas as pl
from jax.experimental.pallas import tpu as pltpu

# Conv hyper-parameters fixed by the module
C_IN = 1
C_OUT = 2
KSIZE = 3
STRIDE = 2
PAD = 1
DIL = 2


def _conv_kernel(w_ref, x_ref, o_ref):
    """One batch-tile grid step of the conv (both output channels fused).

    w_ref: (18,)                 f32 SMEM -- flattened OIHW weights (prefetched)
    x_ref: (Bt, he, we)          f32 VMEM -- even-phase padded planes
    o_ref: (Bt, C_OUT, ho, wo)   f32 VMEM -- output planes for this batch tile
    """
    bt, he, we = x_ref.shape
    ho = he - (KSIZE - 1)
    wo = we - (KSIZE - 1)

    x = x_ref[...]
    # Hoist the lane (width) shifts: 3 lane-shifted views, built once.
    cols = [x[:, :, kw:kw + wo] for kw in range(KSIZE)]

    accs = [jnp.zeros((bt, ho, wo), jnp.float32) for _ in range(C_OUT)]
    for kh in range(KSIZE):
        for kw in range(KSIZE):
            # Sublane-only slice of an already lane-shifted view; reused by
            # both output channels.
            tap = cols[kw][:, kh:kh + ho, :]
            for oc in range(C_OUT):
                w = w_ref[oc * KSIZE * KSIZE + kh * KSIZE + kw]
                accs[oc] = accs[oc] + w * tap

    for oc in range(C_OUT):
        o_ref[:, oc, :, :] = accs[oc]


def conv2d_pallas(x, weight):
    """x: (B, 1, H, W) f32 NCHW;  weight: (2, 1, 3, 3) f32 OIHW."""
    B, C, H, W = x.shape
    assert C == C_IN
    ho = (H + 2 * PAD - DIL * (KSIZE - 1) - 1) // STRIDE + 1
    wo = (W + 2 * PAD - DIL * (KSIZE - 1) - 1) // STRIDE + 1

    # --- glue: pad + even-phase extraction (one fused XLA op, no arithmetic) --
    xp = jnp.pad(x[:, 0].astype(jnp.float32), ((0, 0), (PAD, PAD), (PAD, PAD)))
    xe = xp[:, ::STRIDE, ::STRIDE]                      # (B, he, we)
    he, we = xe.shape[1], xe.shape[2]
    assert he == ho + KSIZE - 1 and we == wo + KSIZE - 1

    # --- batch packing: several planes per grid step, under a VMEM budget ----
    per_batch_bytes = (he * we + C_OUT * ho * wo) * 4
    budget = 8 * 1024 * 1024                            # per double-buffered set
    bt = max(1, min(B, budget // (2 * per_batch_bytes)))
    n_steps = -(-B // bt)                               # cdiv
    b_pad = n_steps * bt
    if b_pad != B:                                      # pad batch to a multiple of bt
        xe = jnp.pad(xe, ((0, b_pad - B), (0, 0), (0, 0)))

    # Flat 1-D SMEM weights: f32[18] (avoids 2-D SMEM tile padding).
    w_flat = weight.reshape(-1).astype(jnp.float32)

    grid_spec = pltpu.PrefetchScalarGridSpec(
        num_scalar_prefetch=1,
        grid=(n_steps,),
        in_specs=[
            pl.BlockSpec((bt, he, we), lambda b, w: (b, 0, 0)),
        ],
        out_specs=pl.BlockSpec((bt, C_OUT, ho, wo),
                               lambda b, w: (b, 0, 0, 0)),
    )
    out = pl.pallas_call(
        _conv_kernel,
        out_shape=jax.ShapeDtypeStruct((b_pad, C_OUT, ho, wo), jnp.float32),
        grid_spec=grid_spec,
        compiler_params=pltpu.CompilerParams(
            dimension_semantics=("parallel",),
            vmem_limit_bytes=32 * 1024 * 1024),
    )(w_flat, xe)
    if b_pad != B:
        out = out[:B]
    return out


def conv2d(x, weight):
    """Size-based dispatcher: tiny problems are pure launch overhead in Pallas."""
    B, _, H, W = x.shape
    if B * H * W < (1 << 16):
        return jax.lax.conv_general_dilated(
            x.astype(jnp.float32), weight.astype(jnp.float32),
            window_strides=(STRIDE, STRIDE),
            padding=((PAD, PAD), (PAD, PAD)),
            rhs_dilation=(DIL, DIL),
            dimension_numbers=("NCHW", "OIHW", "NCHW"))
    return conv2d_pallas(x, weight)


def _reference(x, weight):
    return jax.lax.conv_general_dilated(
        x, weight,
        window_strides=(STRIDE, STRIDE),
        padding=((PAD, PAD), (PAD, PAD)),
        rhs_dilation=(DIL, DIL),
        dimension_numbers=("NCHW", "OIHW", "NCHW"))


if __name__ == "__main__":
    key = jax.random.PRNGKey(0)
    kx, kw, kx2 = jax.random.split(key, 3)

    # Small shapes consistent with the module (in_channels must be 1).
    B, H, W = 2, 16, 16
    x = jax.random.normal(kx, (B, C_IN, H, W), dtype=jnp.float32)
    weight = jax.random.normal(kw, (C_OUT, C_IN, KSIZE, KSIZE),
                               dtype=jnp.float32) * 0.1
    # Module passes bias=None -> no bias term.

    conv = jax.jit(conv2d_pallas)          # exercise the Pallas kernel itself
    out = jax.block_until_ready(conv(x, weight))
    ref = _reference(x, weight)
    assert out.shape == ref.shape == (B, C_OUT, 7, 7), (out.shape, ref.shape)
    assert jnp.allclose(out, ref, atol=1e-5, rtol=1e-5), float(
        jnp.max(jnp.abs(out - ref)))

    # Odd spatial dims / different batch still go through the same kernel.
    x2 = jax.random.normal(kx2, (3, C_IN, 15, 17), dtype=jnp.float32)
    out2 = jax.block_until_ready(jax.jit(conv2d_pallas)(x2, weight))
    ref2 = _reference(x2, weight)
    assert out2.shape == ref2.shape
    assert jnp.allclose(out2, ref2, atol=1e-5, rtol=1e-5), float(
        jnp.max(jnp.abs(out2 - ref2)))

    # Dispatcher path (falls back to lax.conv at these tiny shapes).
    out3 = jax.block_until_ready(jax.jit(conv2d)(x, weight))
    assert jnp.allclose(out3, ref, atol=1e-5, rtol=1e-5)

    print("KERNEL_OK")
</pallas_src>

<mosaic_0001>
module attributes {stable_mosaic.version = 11 : i64} {
  func.func @_conv_kernel(%arg0: i32, %arg1: memref<18xf32, #tpu.memory_space<smem>>, %arg2: memref<2x9x9xf32, #tpu.memory_space<vmem>>, %arg3: memref<2x2x7x7xf32, #tpu.memory_space<vmem>>) attributes {dimension_semantics = [#tpu.dimension_semantics<parallel>], iteration_bounds = array<i64: 1>, scalar_prefetch = 1 : i64, scratch_operands = 0 : i64, tpu.core_type = #tpu.core_type<tc>, window_params = [{transform_indices = @transform_0, window_bounds = array<i64: 2, 9, 9>}, {transform_indices = @transform_1, window_bounds = array<i64: 2, 2, 7, 7>}]} {
    %c0 = arith.constant 0 : index
    %c0_0 = arith.constant 0 : index
    %c0_1 = arith.constant 0 : index
    %0 = vector.load %arg2[%c0, %c0_0, %c0_1] : memref<2x9x9xf32, #tpu.memory_space<vmem>>, vector<2x9x9xf32>
    %1 = vector.extract_strided_slice %0 {offsets = [0, 0, 0], sizes = [2, 9, 7], strides = [1, 1, 1]} : vector<2x9x9xf32> to vector<2x9x7xf32>
    %2 = vector.extract_strided_slice %0 {offsets = [0, 0, 1], sizes = [2, 9, 7], strides = [1, 1, 1]} : vector<2x9x9xf32> to vector<2x9x7xf32>
    %3 = vector.extract_strided_slice %0 {offsets = [0, 0, 2], sizes = [2, 9, 7], strides = [1, 1, 1]} : vector<2x9x9xf32> to vector<2x9x7xf32>
    %cst = arith.constant 0.000000e+00 : f32
    %4 = vector.broadcast %cst : f32 to vector<2x7x7xf32>
    %cst_2 = arith.constant 0.000000e+00 : f32
    %5 = vector.broadcast %cst_2 : f32 to vector<2x7x7xf32>
    %6 = vector.extract_strided_slice %1 {offsets = [0, 0, 0], sizes = [2, 7, 7], strides = [1, 1, 1]} : vector<2x9x7xf32> to vector<2x7x7xf32>
    %c0_3 = arith.constant 0 : index
    %7 = memref.load %arg1[%c0_3] : memref<18xf32, #tpu.memory_space<smem>>
    %8 = vector.broadcast %7 : f32 to vector<2x7x7xf32>
    %9 = arith.mulf %8, %6 : vector<2x7x7xf32>
    %10 = arith.addf %4, %9 : vector<2x7x7xf32>
    %c9 = arith.constant 9 : index
    %11 = memref.load %arg1[%c9] : memref<18xf32, #tpu.memory_space<smem>>
    %12 = vector.broadcast %11 : f32 to vector<2x7x7xf32>
    %13 = arith.mulf %12, %6 : vector<2x7x7xf32>
    %14 = arith.addf %5, %13 : vector<2x7x7xf32>
    %15 = vector.extract_strided_slice %2 {offsets = [0, 0, 0], sizes = [2, 7, 7], strides = [1, 1, 1]} : vector<2x9x7xf32> to vector<2x7x7xf32>
    %c1 = arith.constant 1 : index
    %16 = memref.load %arg1[%c1] : memref<18xf32, #tpu.memory_space<smem>>
    %17 = vector.broadcast %16 : f32 to vector<2x7x7xf32>
    %18 = arith.mulf %17, %15 : vector<2x7x7xf32>
    %19 = arith.addf %10, %18 : vector<2x7x7xf32>
    %c10 = arith.constant 10 : index
    %20 = memref.load %arg1[%c10] : memref<18xf32, #tpu.memory_space<smem>>
    %21 = vector.broadcast %20 : f32 to vector<2x7x7xf32>
    %22 = arith.mulf %21, %15 : vector<2x7x7xf32>
    %23 = arith.addf %14, %22 : vector<2x7x7xf32>
    %24 = vector.extract_strided_slice %3 {offsets = [0, 0, 0], sizes = [2, 7, 7], strides = [1, 1, 1]} : vector<2x9x7xf32> to vector<2x7x7xf32>
    %c2 = arith.constant 2 : index
    %25 = memref.load %arg1[%c2] : memref<18xf32, #tpu.memory_space<smem>>
    %26 = vector.broadcast %25 : f32 to vector<2x7x7xf32>
    %27 = arith.mulf %26, %24 : vector<2x7x7xf32>
    %28 = arith.addf %19, %27 : vector<2x7x7xf32>
    %c11 = arith.constant 11 : index
    %29 = memref.load %arg1[%c11] : memref<18xf32, #tpu.memory_space<smem>>
    %30 = vector.broadcast %29 : f32 to vector<2x7x7xf32>
    %31 = arith.mulf %30, %24 : vector<2x7x7xf32>
    %32 = arith.addf %23, %31 : vector<2x7x7xf32>
    %33 = vector.extract_strided_slice %1 {offsets = [0, 1, 0], sizes = [2, 7, 7], strides = [1, 1, 1]} : vector<2x9x7xf32> to vector<2x7x7xf32>
    %c3 = arith.constant 3 : index
    %34 = memref.load %arg1[%c3] : memref<18xf32, #tpu.memory_space<smem>>
    %35 = vector.broadcast %34 : f32 to vector<2x7x7xf32>
    %36 = arith.mulf %35, %33 : vector<2x7x7xf32>
    %37 = arith.addf %28, %36 : vector<2x7x7xf32>
    %c12 = arith.constant 12 : index
    %38 = memref.load %arg1[%c12] : memref<18xf32, #tpu.memory_space<smem>>
    %39 = vector.broadcast %38 : f32 to vector<2x7x7xf32>
    %40 = arith.mulf %39, %33 : vector<2x7x7xf32>
    %41 = arith.addf %32, %40 : vector<2x7x7xf32>
    %42 = vector.extract_strided_slice %2 {offsets = [0, 1, 0], sizes = [2, 7, 7], strides = [1, 1, 1]} : vector<2x9x7xf32> to vector<2x7x7xf32>
    %c4 = arith.constant 4 : index
    %43 = memref.load %arg1[%c4] : memref<18xf32, #tpu.memory_space<smem>>
    %44 = vector.broadcast %43 : f32 to vector<2x7x7xf32>
    %45 = arith.mulf %44, %42 : vector<2x7x7xf32>
    %46 = arith.addf %37, %45 : vector<2x7x7xf32>
    %c13 = arith.constant 13 : index
    %47 = memref.load %arg1[%c13] : memref<18xf32, #tpu.memory_space<smem>>
    %48 = vector.broadcast %47 : f32 to vector<2x7x7xf32>
    %49 = arith.mulf %48, %42 : vector<2x7x7xf32>
    %50 = arith.addf %41, %49 : vector<2x7x7xf32>
    %51 = vector.extract_strided_slice %3 {offsets = [0, 1, 0], sizes = [2, 7, 7], strides = [1, 1, 1]} : vector<2x9x7xf32> to vector<2x7x7xf32>
    %c5 = arith.constant 5 : index
    %52 = memref.load %arg1[%c5] : memref<18xf32, #tpu.memory_space<smem>>
    %53 = vector.broadcast %52 : f32 to vector<2x7x7xf32>
    %54 = arith.mulf %53, %51 : vector<2x7x7xf32>
    %55 = arith.addf %46, %54 : vector<2x7x7xf32>
    %c14 = arith.constant 14 : index
    %56 = memref.load %arg1[%c14] : memref<18xf32, #tpu.memory_space<smem>>
    %57 = vector.broadcast %56 : f32 to vector<2x7x7xf32>
    %58 = arith.mulf %57, %51 : vector<2x7x7xf32>
    %59 = arith.addf %50, %58 : vector<2x7x7xf32>
    %60 = vector.extract_strided_slice %1 {offsets = [0, 2, 0], sizes = [2, 7, 7], strides = [1, 1, 1]} : vector<2x9x7xf32> to vector<2x7x7xf32>
    %c6 = arith.constant 6 : index
    %61 = memref.load %arg1[%c6] : memref<18xf32, #tpu.memory_space<smem>>
    %62 = vector.broadcast %61 : f32 to vector<2x7x7xf32>
    %63 = arith.mulf %62, %60 : vector<2x7x7xf32>
    %64 = arith.addf %55, %63 : vector<2x7x7xf32>
    %c15 = arith.constant 15 : index
    %65 = memref.load %arg1[%c15] : memref<18xf32, #tpu.memory_space<smem>>
    %66 = vector.broadcast %65 : f32 to vector<2x7x7xf32>
    %67 = arith.mulf %66, %60 : vector<2x7x7xf32>
    %68 = arith.addf %59, %67 : vector<2x7x7xf32>
    %69 = vector.extract_strided_slice %2 {offsets = [0, 2, 0], sizes = [2, 7, 7], strides = [1, 1, 1]} : vector<2x9x7xf32> to vector<2x7x7xf32>
    %c7 = arith.constant 7 : index
    %70 = memref.load %arg1[%c7] : memref<18xf32, #tpu.memory_space<smem>>
    %71 = vector.broadcast %70 : f32 to vector<2x7x7xf32>
    %72 = arith.mulf %71, %69 : vector<2x7x7xf32>
    %73 = arith.addf %64, %72 : vector<2x7x7xf32>
    %c16 = arith.constant 16 : index
    %74 = memref.load %arg1[%c16] : memref<18xf32, #tpu.memory_space<smem>>
    %75 = vector.broadcast %74 : f32 to vector<2x7x7xf32>
    %76 = arith.mulf %75, %69 : vector<2x7x7xf32>
    %77 = arith.addf %68, %76 : vector<2x7x7xf32>
    %78 = vector.extract_strided_slice %3 {offsets = [0, 2, 0], sizes = [2, 7, 7], strides = [1, 1, 1]} : vector<2x9x7xf32> to vector<2x7x7xf32>
    %c8 = arith.constant 8 : index
    %79 = memref.load %arg1[%c8] : memref<18xf32, #tpu.memory_space<smem>>
    %80 = vector.broadcast %79 : f32 to vector<2x7x7xf32>
    %81 = arith.mulf %80, %78 : vector<2x7x7xf32>
    %82 = arith.addf %73, %81 : vector<2x7x7xf32>
    %c17 = arith.constant 17 : index
    %83 = memref.load %arg1[%c17] : memref<18xf32, #tpu.memory_space<smem>>
    %84 = vector.broadcast %83 : f32 to vector<2x7x7xf32>
    %85 = arith.mulf %84, %78 : vector<2x7x7xf32>
    %86 = arith.addf %77, %85 : vector<2x7x7xf32>
    %c0_4 = arith.constant 0 : index
    %c0_5 = arith.constant 0 : index
    %c0_6 = arith.constant 0 : index
    %c0_7 = arith.constant 0 : index
    %87 = vector.load %arg3[%c0_4, %c0_5, %c0_6, %c0_7] : memref<2x2x7x7xf32, #tpu.memory_space<vmem>>, vector<2x1x7x7xf32>
    %88 = vector.shape_cast %87 : vector<2x1x7x7xf32> to vector<2x7x7xf32>
    %89 = vector.shape_cast %82 : vector<2x7x7xf32> to vector<2x1x7x7xf32>
    tpu.vector_store %arg3[%c0_4, %c0_5, %c0_6, %c0_7], %89 {strides = array<i32>} : memref<2x2x7x7xf32, #tpu.memory_space<vmem>>, vector<2x1x7x7xf32>,
    %c0_8 = arith.constant 0 : index
    %c1_9 = arith.constant 1 : index
    %c0_10 = arith.constant 0 : index
    %c0_11 = arith.constant 0 : index
    %90 = vector.load %arg3[%c0_8, %c1_9, %c0_10, %c0_11] : memref<2x2x7x7xf32, #tpu.memory_space<vmem>>, vector<2x1x7x7xf32>
    %91 = vector.shape_cast %90 : vector<2x1x7x7xf32> to vector<2x7x7xf32>
    %92 = vector.shape_cast %86 : vector<2x7x7xf32> to vector<2x1x7x7xf32>
    tpu.vector_store %arg3[%c0_8, %c1_9, %c0_10, %c0_11], %92 {strides = array<i32>} : memref<2x2x7x7xf32, #tpu.memory_space<vmem>>, vector<2x1x7x7xf32>,
    return
  }
  func.func @transform_0(%arg0: i32, %arg1: memref<18xf32, #tpu.memory_space<smem>>) -> (i32, i32, i32) {
    %c0_i32 = arith.constant 0 : i32
    %c0_i32_0 = arith.constant 0 : i32
    %c0_i32_1 = arith.constant 0 : i32
    return %arg0, %c0_i32, %c0_i32_0 : i32, i32, i32
  }
  func.func @transform_1(%arg0: i32, %arg1: memref<18xf32, #tpu.memory_space<smem>>) -> (i32, i32, i32, i32) {
    %c0_i32 = arith.constant 0 : i32
    %c0_i32_0 = arith.constant 0 : i32
    %c0_i32_1 = arith.constant 0 : i32
    %c0_i32_2 = arith.constant 0 : i32
    return %arg0, %c0_i32, %c0_i32_0, %c0_i32_1 : i32, i32, i32, i32
  }
}

</mosaic_0001>

<bundles_post_ra>
// kernel: conv2d_pallas.1
= control target key start
LH: loop header
LB: loop body
LE: loop exit
PB: predicated region body
PF: predicated region fallthrough
CT: control target
= control target key end

     0   :  { %s519_s0 = inlined_call_operand.vmem [shape: f32[18], index: 0, kind: input, shape index: {}]   ;;  %s520_s1 = inlined_call_operand.vmem [shape: f32[2,9,9], index: 1, kind: input, shape index: {}]   ;;  %s521_s2 = inlined_call_operand.vmem [shape: f32[2,2,7,7], index: 2, kind: output, shape index: {}]  }
   0x1   :  { %s7_s11 = sshll.u32 %s519_s0, 4  ;;  %s8_s11 = int_to_ptr.vmem [resolvable:$true] %s7_s11 }
   0x2   :  { %s344_s12 = scalar_lea.vmem %s8_s11, 16  ;;  %p349_p1 = scmp.lt.s32.totalorder %s8_s11, %s8_s11 }
   0x3   :  { %p345_p0 = scmp.ne.s32.totalorder %s8_s11, %s344_s12  ;;  %p350_p2 = scmp.lt.s32.totalorder %s344_s12, %s344_s12 }
   0x5   :  { %p351_p3 = por %p350_p2, %p349_p1 }
   0x7   :  { %p352_p4 = pnand %p351_p3, %p345_p0 }
   0x9   :  { %355 = shalt.err (!%p352_p4)  }
   0xa   :  { %s358_s13 = smov [#allocation3]  }
   0xb   :  { %10 = dma.vmem_to_smem %s8_s11, 16, %s358_s13, [#allocation2] }
   0xc   :  { %356 = dma.done.wait [#allocation2], 16 }
   0xd   :  { %357 = vsyncadd [#allocation2], 4294967280 }
   0xe   :  { %12 = sfence }
   0xf   :  { %s324_s14 = sld [smem:[#allocation3 + $0xa]]  ;;  %v382_v0 = vld [vmem:[%s520_s1] sm:$0xff]  ;;  %v387_v1 = vld [vmem:[%s520_s1 + $0x10] sm:$0xff]  ;;  %s359_s22 = smov 127   ;;  %v418_v25 = vld [vmem:[%s520_s1 + $0x18] sm:$0x1] }
  0x10   :  { %s323_s15 = sld [smem:[#allocation3 + $0x1]]  ;;  %s360_s27 = smov 126   ;;  %v425_v28 = vld [vmem:[%s520_s1 + $0x8] sm:$0x1]  ;;  %vm185_vm0 = vcmask 1045504   ;;  %vm312_vm1 = vcmask 55296  }
  0x11   :  { %s325_s16 = sld [smem:[#allocation3 + $0x2]] }
  0x12   :  { %s326_s0 = sld [smem:[#allocation3 + $0xb]] }
  0x13   :  { %s329_s21 = sld [smem:[#allocation3 + $0x4]] }
  0x14   :  { %s330_s23 = sld [smem:[#allocation3 + $0xd]] }
  0x15   :  { %v46_v2 = vstv %s324_s14  ;;  %s395_s24 = sld [smem:[#allocation3 + $0x5]] }
  0x16   :  { %v47_v3 = vmul.f32 %v46_v2, %v382_v0  ;;  %v32_v4 = vstv %s323_s15  ;;  %v48_v6 = vmul.f32 %v46_v2, %v387_v1  ;;  %s399_s25 = sld [smem:[#allocation3 + $0xe]] }
  0x17   :  { %v33_v5 = vmul.f32 %v32_v4, %v382_v0  ;;  %v34_v7 = vmul.f32 %v32_v4, %v387_v1  ;;  %v60_v8 = vstv %s325_s16  ;;  %s335_s26 = sld [smem:[#allocation3 + $0x7]] }
  0x18   :  { %51 = vrot.lane.b32.xlu1 %v47_v3, %s359_s22  ;;  %v62_v9 = vmul.f32 %v60_v8, %v387_v1  ;;  %v61_v10 = vmul.f32 %v60_v8, %v382_v0  ;;  %v74_v11 = vstv %s326_s0  ;;  %s336_s28 = sld [smem:[#allocation3 + $0x10]] }
  0x19   :  { %37 = vrot.lane.b32.xlu0 %v33_v5, %s359_s22  ;;  %v112_v12 = vstv %s329_s21  ;;  %v76_v13 = vmul.f32 %v74_v11, %v387_v1  ;;  %v75_v15 = vmul.f32 %v74_v11, %v382_v0  ;;  %s333_s29 = sld [smem:[#allocation3 + $0x6]] }
  0x1a   :  { %v114_v14 = vmul.f32 %v112_v12, %v387_v1  ;;  %v113_v16 = vmul.f32 %v112_v12, %v382_v0  ;;  %v128_v17 = vstv %s330_s23  ;;  %s337_s30 = sld [smem:[#allocation3 + $0x8]] }
  0x1b   :  { %v130_v19 = vmul.f32 %v128_v17, %v387_v1  ;;  %v144_v20 = vstv %s395_s24  ;;  %v129_v22 = vmul.f32 %v128_v17, %v382_v0  ;;  %s431_s7 = sld [smem:[#allocation3 + $0xf]] }
  0x1c   :  { %53 = vrot.lane.b32.xlu1 %v48_v6, %s359_s22  ;;  %v118_v18 = vrot.slane %v114_v14, 1  ;;  %v117_v21 = vrot.slane %v113_v16, 1  ;;  %v160_v23 = vstv %s399_s25  ;;  %v146_v26 = vmul.f32 %v144_v20, %v387_v1  ;;  %s442_s1 = sld [smem:[#allocation3 + $0x11]] }
  0x1d   :  { %39 = vrot.lane.b32.xlu0 %v34_v7, %s359_s22  ;;  %v217_v24 = vstv %s335_s26  ;;  %v145_v27 = vmul.f32 %v144_v20, %v382_v0  ;;  %v134_v29 = vrot.slane %v130_v19, 1  ;;  %v162_v30 = vmul.f32 %v160_v23, %v387_v1  ;;  %s19_s8 = sld [smem:[#allocation3]] }
  0x1e   :  { %v161_v31 = vmul.f32 %v160_v23, %v382_v0  ;;  %v220_v32 = vmul.f32 %v217_v24, %v387_v1  ;;  %v133_v33 = vrot.slane %v129_v22, 1  ;;  %v221_v34 = vmul.f32 %v217_v24, %v418_v25  ;;  %s327_s9 = sld [smem:[#allocation3 + $0x3]] }
  0x1f   :  { %v218_v35 = vmul.f32 %v217_v24, %v382_v0  ;;  %v219_v36 = vmul.f32 %v217_v24, %v425_v28  ;;  %v150_v37 = vrot.slane %v146_v26, 1  ;;  %v149_v38 = vrot.slane %v145_v27, 1  ;;  %s322_s10 = sld [smem:[#allocation3 + $0x9]] }
  0x20   :  { %67 = vrot.lane.b32.xlu1 %v62_v9, %s360_s27  ;;  %v241_v39 = vstv %s336_s28  ;;  %v176_v40 = vstv %s333_s29  ;;  %v166_v41 = vrot.slane %v162_v30, 1  ;;  %v165_v42 = vrot.slane %v161_v31, 1  ;;  %s328_s11 = sld [smem:[#allocation3 + $0xc]] }
  0x21   :  { %65 = vrot.lane.b32.xlu0 %v61_v10, %s360_s27  ;;  %v229_v43 = vrot.slane %v220_v32, 2  ;;  %v265_v44 = vstv %s337_s30  ;;  %v230_v45 = vrot.slane %v221_v34, 2  ;;  %v226_v46 = vrot.slane %v218_v35, 2 }
  0x22   :  { %v179_v47 = vmul.f32 %v176_v40, %v387_v1  ;;  %v180_v48 = vmul.f32 %v176_v40, %v418_v25  ;;  %v227_v49 = vrot.slane %v219_v36, 2  ;;  %v244_v50 = vmul.f32 %v241_v39, %v387_v1 }
  0x23   :  { %v177_v51 = vmul.f32 %v176_v40, %v382_v0  ;;  %v178_v52 = vmul.f32 %v176_v40, %v425_v28  ;;  %v245_v53 = vmul.f32 %v241_v39, %v418_v25  ;;  %v242_v54 = vmul.f32 %v241_v39, %v382_v0 }
  0x24   :  { %81 = vrot.lane.b32.xlu1 %v76_v13, %s360_s27  ;;  %v189_v55 = vrot.slane %v179_v47, 2  ;;  %v190_v56 = vrot.slane %v180_v48, 2  ;;  %v243_v57 = vmul.f32 %v241_v39, %v425_v28  ;;  %v197_v60 = vstv %s431_s7 }
  0x25   :  { %79 = vrot.lane.b32.xlu0 %v75_v15, %s360_s27  ;;  %v186_v58 = vrot.slane %v177_v51, 2  ;;  %v187_v59 = vrot.slane %v178_v52, 2  ;;  %v200_v62 = vmul.f32 %v197_v60, %v387_v1  ;;  %v201_v63 = vmul.f32 %v197_v60, %v418_v25 }
  0x26   :  { %v453_v61 = vsel %vm185_vm0, %v189_v55, %v190_v56  ;;  %v198_v2 = vmul.f32 %v197_v60, %v382_v0  ;;  %v231_v3 = vsel %vm185_vm0, %v229_v43, %v230_v45  ;;  %v199_v5 = vmul.f32 %v197_v60, %v425_v28 }
  0x27   :  { %v460_v4 = vsel %vm185_vm0, %v186_v58, %v187_v59  ;;  %v228_v6 = vsel %vm185_vm0, %v226_v46, %v227_v49  ;;  %v209_v7 = vrot.slane %v200_v62, 2  ;;  %v210_v8 = vrot.slane %v201_v63, 2 }
  0x28   :  { %121 = vrot.lane.b32.xlu1 %v118_v18, %s359_s22  ;;  %v206_v9 = vrot.slane %v198_v2, 2  ;;  %v253_v10 = vrot.slane %v244_v50, 2  ;;  %v268_v11 = vmul.f32 %v265_v44, %v387_v1  ;;  %v269_v12 = vmul.f32 %v265_v44, %v418_v25 }
  0x29   :  { %119 = vrot.lane.b32.xlu0 %v117_v21, %s359_s22  ;;  %v207_v13 = vrot.slane %v199_v5, 2  ;;  %v254_v14 = vrot.slane %v245_v53, 2  ;;  %v250_v15 = vrot.slane %v242_v54, 2  ;;  %v251_v16 = vrot.slane %v243_v57, 2 }
  0x2a   :  { %v469_v17 = vsel %vm185_vm0, %v209_v7, %v210_v8  ;;  %v266_v18 = vmul.f32 %v265_v44, %v382_v0  ;;  %v267_v19 = vmul.f32 %v265_v44, %v425_v28  ;;  %v289_v20 = vstv %s442_s1 }
  0x2b   :  { %v475_v21 = vsel %vm185_vm0, %v206_v9, %v207_v13  ;;  %v277_v22 = vrot.slane %v268_v11, 2  ;;  %v278_v23 = vrot.slane %v269_v12, 2  ;;  %v255_v24 = vsel %vm185_vm0, %v253_v10, %v254_v14 }
  0x2c   :  { %137 = vrot.lane.b32.xlu1 %v134_v29, %s359_s22  ;;  %v252_v26 = vsel %vm185_vm0, %v250_v15, %v251_v16  ;;  %v292_v27 = vmul.f32 %v289_v20, %v387_v1  ;;  %v293_v29 = vmul.f32 %v289_v20, %v418_v25  ;;  %v274_v30 = vrot.slane %v266_v18, 2 }
  0x2d   :  { %135 = vrot.lane.b32.xlu0 %v133_v33, %s359_s22  ;;  %v275_v31 = vrot.slane %v267_v19, 2  ;;  %v290_v32 = vmul.f32 %v289_v20, %v382_v0  ;;  %v291_v33 = vmul.f32 %v289_v20, %v425_v28  ;;  %v279_v34 = vsel %vm185_vm0, %v277_v22, %v278_v23 }
  0x2e   :  { %v301_v35 = vrot.slane %v292_v27, 2  ;;  %v302_v36 = vrot.slane %v293_v29, 2  ;;  %v20_v45 = vstv %s19_s8  ;;  %v88_v47 = vstv %s327_s9 }
  0x2f   :  { %v299_v39 = vrot.slane %v291_v33, 2  ;;  %v22_v48 = vmul.f32 %v20_v45, %v387_v1  ;;  %v21_v49 = vmul.f32 %v20_v45, %v382_v0  ;;  %v26_v51 = vstv %s322_s10 }
  0x30   :  { %153 = vrot.lane.b32.xlu1 %v150_v37, %s360_s27  ;;  %v276_v37 = vsel %vm185_vm0, %v274_v30, %v275_v31  ;;  %v303_v25 = vsel %vm185_vm0, %v301_v35, %v302_v36  ;;  %v90_v53 = vmul.f32 %v88_v47, %v387_v1  ;;  %v89_v54 = vmul.f32 %v88_v47, %v382_v0 }
  0x31   :  { %151 = vrot.lane.b32.xlu0 %v149_v38, %s360_s27  ;;  %v298_v38 = vrot.slane %v290_v32, 2  ;;  %v100_v55 = vstv %s328_s11  ;;  %v28_v56 = vmul.f32 %v26_v51, %v387_v1  ;;  %v27_v58 = vmul.f32 %v26_v51, %v382_v0 }
  0x32   :  { %v94_v63 = vrot.slane %v90_v53, 1  ;;  %v101_v7 = vmul.f32 %v100_v55, %v382_v0 }
  0x33   :  { %v300_v28 = vsel %vm185_vm0, %v298_v38, %v299_v39 }
  0x34   :  { %169 = vrot.lane.b32.xlu1 %v166_v41, %s360_s27  ;;  %v105_v18 = vrot.slane %v101_v7, 1 }
  0x35   :  { %167 = vrot.lane.b32.xlu0 %v165_v42, %s360_s27 }
  0x38   :  { %234 = vrot.lane.b32.xlu1 %v231_v3, %s359_s22  ;;  %v102_v3 = vmul.f32 %v100_v55, %v387_v1 }
  0x39   :  { %232 = vrot.lane.b32.xlu0 %v228_v6, %s359_s22  ;;  %v93_v6 = vrot.slane %v89_v54, 1 }
  0x3a   :  { %v106_v13 = vrot.slane %v102_v3, 1 }
  0x3c   :  { %258 = vrot.lane.b32.xlu1 %v255_v24, %s359_s22 }
  0x3d   :  { %256 = vrot.lane.b32.xlu0 %v252_v26, %s359_s22 }
  0x40   :  { %282 = vrot.lane.b32.xlu1 %v279_v34, %s360_s27 }
  0x41   :  { %280 = vrot.lane.b32.xlu0 %v276_v37, %s360_s27 }
  0x44   :  { %306 = vrot.lane.b32.xlu1 %v303_v25, %s360_s27 }
  0x45   :  { %304 = vrot.lane.b32.xlu0 %v300_v28, %s360_s27 }
  0x8a   :  { %v52_v40 = vpop.permute.xlu1 %51 }
  0x8b   :  { %v38_v41 = vpop.permute.xlu0 %37  ;;  %v57_v9 = vadd.f32 %v52_v40, %v27_v58 }
  0x8c   :  { %v43_v59 = vadd.f32 %v38_v41, %v21_v49 }
  0x8e   :  { %v54_v42 = vpop.permute.xlu1 %53 }
  0x8f   :  { %v40_v43 = vpop.permute.xlu0 %39  ;;  %v58_v8 = vadd.f32 %v54_v42, %v28_v56 }
  0x90   :  { %v44_v57 = vadd.f32 %v40_v43, %v22_v48 }
  0x92   :  { %v68_v44 = vpop.permute.xlu1 %67 }
  0x93   :  { %v66_v46 = vpop.permute.xlu0 %65  ;;  %v72_v62 = vadd.f32 %v68_v44, %v44_v57 }
  0x94   :  { %v71_v5 = vadd.f32 %v66_v46, %v43_v59 }
  0x95   :  { %v98_v12 = vadd.f32 %v94_v63, %v72_v62 }
  0x96   :  { %v82_v50 = vpop.permute.xlu1 %81  ;;  %v97_v16 = vadd.f32 %v93_v6, %v71_v5 }
  0x97   :  { %v80_v52 = vpop.permute.xlu0 %79  ;;  %v86_v11 = vadd.f32 %v82_v50, %v58_v8 }
  0x98   :  { %v85_v15 = vadd.f32 %v80_v52, %v57_v9 }
  0x99   :  { %v110_v23 = vadd.f32 %v106_v13, %v86_v11 }
  0x9a   :  { %v122_v60 = vpop.permute.xlu1 %121  ;;  %v109_v26 = vadd.f32 %v105_v18, %v85_v15 }
  0x9b   :  { %v120_v2 = vpop.permute.xlu0 %119  ;;  %v126_v19 = vadd.f32 %v122_v60, %v98_v12 }
  0x9c   :  { %v125_v20 = vadd.f32 %v120_v2, %v97_v16 }
  0x9e   :  { %v138_v10 = vpop.permute.xlu1 %137 }
  0x9f   :  { %v136_v14 = vpop.permute.xlu0 %135  ;;  %v142_v29 = vadd.f32 %v138_v10, %v110_v23 }
  0xa0   :  { %v141_v30 = vadd.f32 %v136_v14, %v109_v26 }
  0xa2   :  { %v154_v22 = vpop.permute.xlu1 %153 }
  0xa3   :  { %v158_v24 = vadd.f32 %v154_v22, %v126_v19  ;;  %v152_v1 = vpop.permute.xlu0 %151 }
  0xa4   :  { %v157_v27 = vadd.f32 %v152_v1, %v125_v20 }
  0xa5   :  { %v195_v0 = vadd.f32 %v453_v61, %v158_v24 }
  0xa6   :  { %v170_v31 = vpop.permute.xlu1 %169  ;;  %v194_v32 = vadd.f32 %v460_v4, %v157_v27 }
  0xa7   :  { %v174_v33 = vadd.f32 %v170_v31, %v142_v29  ;;  %v168_v34 = vpop.permute.xlu0 %167 }
  0xa8   :  { %v173_v35 = vadd.f32 %v168_v34, %v141_v30 }
  0xa9   :  { %v215_v36 = vadd.f32 %v469_v17, %v174_v33 }
  0xaa   :  { %v235_v37 = vpop.permute.xlu1 %234  ;;  %v214_v38 = vadd.f32 %v475_v21, %v173_v35 }
  0xab   :  { %v233_v39 = vpop.permute.xlu0 %232  ;;  %v239_v40 = vadd.f32 %v235_v37, %v195_v0 }
  0xac   :  { %v238_v41 = vadd.f32 %v233_v39, %v194_v32 }
  0xae   :  { %v259_v25 = vpop.permute.xlu1 %258 }
  0xaf   :  { %v257_v28 = vpop.permute.xlu0 %256  ;;  %v263_v45 = vadd.f32 %v259_v25, %v215_v36 }
  0xb0   :  { %v262_v4 = vadd.f32 %v257_v28, %v214_v38 }
  0xb2   :  { %v283_v42 = vpop.permute.xlu1 %282 }
  0xb3   :  { %v287_v61 = vadd.f32 %v283_v42, %v239_v40  ;;  %v281_v43 = vpop.permute.xlu0 %280 }
  0xb4   :  { %v286_v44 = vadd.f32 %v281_v43, %v238_v41 }
  0xb5   :  { %314 = vst.msk [vmem:[%s521_s2 + $0x10] sm:$0x7f] %vm312_vm1, %v287_v61 }
  0xb6   :  { %313 = vst.msk [vmem:[%s521_s2] sm:$0x7f] %vm312_vm1, %v286_v44  ;;  %v307_v17 = vpop.permute.xlu1 %306 }
  0xb7   :  { %v311_v21 = vadd.f32 %v307_v17, %v263_v45  ;;  %v305_v46 = vpop.permute.xlu0 %304 }
  0xb8   :  { %v310_v47 = vadd.f32 %v305_v46, %v262_v4 }
  0xb9   :  { %340 = vst.msk [vmem:[%s521_s2 + $0x18] sm:$0x7f] %vm312_vm1, %v311_v21 }
  0xba   :  { %339 = vst.msk [vmem:[%s521_s2 + $0x8] sm:$0x7f] %vm312_vm1, %v310_v47 }

</bundles_post_ra>
